<compile_context>
chip_gen: v5e
topology: v5e:2x2
jax: 0.10.0
libtpu: 0.0.40
codegen_flags: <defaults>
</compile_context>

<pallas_src>
import functools

import jax
import jax.numpy as jnp
from jax import lax
from jax.experimental import pallas as pl
from jax.experimental.pallas import tpu as pltpu


_LANE = 128          # lane-dense output padding target
_MAX_BLOCK_B = 2048  # batch tile sized for v7x's 64 MiB VMEM; fine on v5e/v6e


def _keep_mask(shape, seed_i32, salt, p, block_b):
    """Bernoulli(1-p) keep mask from a counter-based integer hash.

    Pure 32-bit VPU integer work (no float convert, no stateful TPU PRNG),
    deterministic given (seed, program_id, element index, layer salt).
    """
    thresh = jnp.uint32(min(int(round(p * 2.0 ** 32)), 2 ** 32 - 1))
    rows = lax.broadcasted_iota(jnp.int32, shape, 0)
    cols = lax.broadcasted_iota(jnp.int32, shape, 1)
    # Global element index within this dropout layer -> independent masks
    # across batch tiles (and across the two v7x TensorCores).
    gidx = (pl.program_id(0) * block_b + rows) * shape[1] + cols
    x = gidx.astype(jnp.uint32)
    x = x ^ (seed_i32.astype(jnp.uint32) * jnp.uint32(0x9E3779B9))
    x = x ^ jnp.uint32((salt * 0x85EBCA6B) & 0xFFFFFFFF)
    # murmur3-style finalizer
    x = x ^ (x >> 16)
    x = x * jnp.uint32(0x7FEB352D)
    x = x ^ (x >> 15)
    x = x * jnp.uint32(0x846CA68B)
    x = x ^ (x >> 16)
    return x >= thresh          # P(keep) = 1 - p


def _dropout(h, seed_i32, salt, p, block_b):
    if p >= 1.0:
        return jnp.zeros_like(h)
    keep = _keep_mask(h.shape, seed_i32, salt, p, block_b)
    return jnp.where(keep, h, 0.0) * jnp.float32(1.0 / (1.0 - p))


def _qnet_drop_kernel(seed_ref,                                   # scalar prefetch
                      x_ref, w1_ref, b1_ref, w2_ref, b2_ref, w3_ref, b3_ref,
                      out_ref,
                      *, p, training, block_b):
    seed = seed_ref[0]
    x = x_ref[...]                                                # bf16 (TB, D)

    # --- layer 1: Linear + ReLU + Dropout --------------------------------
    h = jnp.dot(x, w1_ref[...], preferred_element_type=jnp.float32) + b1_ref[...]
    h = jnp.maximum(h, 0.0)
    if training and p > 0.0:
        h = _dropout(h, seed, 1, p, block_b)

    # --- layer 2: Linear + ReLU + Dropout --------------------------------
    h = jnp.dot(h.astype(jnp.bfloat16), w2_ref[...],
                preferred_element_type=jnp.float32) + b2_ref[...]
    h = jnp.maximum(h, 0.0)
    if training and p > 0.0:
        h = _dropout(h, seed, 2, p, block_b)

    # --- head: Linear (output lanes padded to 128) ------------------------
    q = jnp.dot(h.astype(jnp.bfloat16), w3_ref[...],
                preferred_element_type=jnp.float32) + b3_ref[...]
    out_ref[...] = q.astype(out_ref.dtype)


def qnet_drop_forward(x, params, seed, *, dropout=0.5, training=True,
                      block_b=None):
    """Pallas-backed QNetDrop forward.

    x:      [B, input_dim] float32
    params: dict with w1 [D,H], b1 [H], w2 [H,H], b2 [H], w3 [H,A], b3 [A]
    seed:   int / int32 scalar for the dropout mask hash (training mode)
    """
    B, D = x.shape
    H = params["w1"].shape[1]
    A = params["w3"].shape[1]
    A_pad = ((A + _LANE - 1) // _LANE) * _LANE

    if block_b is None:
        block_b = B if B <= _MAX_BLOCK_B else _MAX_BLOCK_B
    # (8,128) rule: batch block must equal B or be a multiple of 8.
    assert block_b == B or block_b % 8 == 0, "block_b must be B or a multiple of 8"
    grid = (pl.cdiv(B, block_b),)

    # bf16 MXU operands (f32 accumulation in-kernel).  Ideally the caller
    # caches these casts/pads across calls; done here for self-containment.
    x_bf16 = x.astype(jnp.bfloat16)
    w1 = params["w1"].astype(jnp.bfloat16)
    w2 = params["w2"].astype(jnp.bfloat16)
    w3 = jnp.zeros((H, A_pad), jnp.bfloat16).at[:, :A].set(
        params["w3"].astype(jnp.bfloat16))
    b1 = params["b1"].reshape(1, H).astype(jnp.float32)
    b2 = params["b2"].reshape(1, H).astype(jnp.float32)
    b3 = jnp.zeros((1, A_pad), jnp.float32).at[:, :A].set(
        params["b3"].reshape(1, A).astype(jnp.float32))

    seed_arr = jnp.asarray([seed], dtype=jnp.int32)

    kernel = functools.partial(_qnet_drop_kernel, p=float(dropout),
                               training=bool(training), block_b=int(block_b))

    # index_maps receive (grid_i, *scalar_prefetch_refs).
    x_spec = pl.BlockSpec((block_b, D), lambda i, s: (i, 0))
    out_spec = pl.BlockSpec((block_b, A_pad), lambda i, s: (i, 0))

    def resident(shape):
        # Same block for every grid step -> weights/biases stay VMEM-resident.
        return pl.BlockSpec(shape, lambda i, s: (0, 0))

    q_pad = pl.pallas_call(
        kernel,
        out_shape=jax.ShapeDtypeStruct((B, A_pad), jnp.float32),
        grid_spec=pltpu.PrefetchScalarGridSpec(
            num_scalar_prefetch=1,
            grid=grid,
            in_specs=[x_spec,
                      resident((D, H)), resident((1, H)),
                      resident((H, H)), resident((1, H)),
                      resident((H, A_pad)), resident((1, A_pad))],
            out_specs=out_spec),
        compiler_params=pltpu.CompilerParams(
            dimension_semantics=("parallel",),
            vmem_limit_bytes=32 * 1024 * 1024),
    )(seed_arr, x_bf16, w1, b1, w2, b2, w3, b3)

    return q_pad[:, :A]


def init_params(key, input_dim, hidden, n_actions):
    """Deterministic synthetic params (torch-Linear-like fan-in uniform)."""
    ks = jax.random.split(key, 6)

    def lin(kw, kb, fan_in, fan_out):
        bound = 1.0 / jnp.sqrt(fan_in)
        w = jax.random.uniform(kw, (fan_in, fan_out), jnp.float32, -bound, bound)
        b = jax.random.uniform(kb, (fan_out,), jnp.float32, -bound, bound)
        return w, b

    w1, b1 = lin(ks[0], ks[1], input_dim, hidden)
    w2, b2 = lin(ks[2], ks[3], hidden, hidden)
    w3, b3 = lin(ks[4], ks[5], hidden, n_actions)
    return dict(w1=w1, b1=b1, w2=w2, b2=b2, w3=w3, b3=b3)


if __name__ == "__main__":
    key = jax.random.PRNGKey(0)
    k_x, k_p = jax.random.split(key)

    B, INPUT_DIM, HIDDEN, N_ACTIONS = 8, 32, 64, 5
    x = jax.random.normal(k_x, (B, INPUT_DIM), dtype=jnp.float32)
    params = init_params(k_p, INPUT_DIM, HIDDEN, N_ACTIONS)

    # training-mode forward (MC-dropout style), deterministic given seed=0
    q_train = qnet_drop_forward(x, params, seed=0, dropout=0.5, training=True)
    jax.block_until_ready(q_train)

    # eval-mode forward (dropout = identity)
    q_eval = qnet_drop_forward(x, params, seed=0, dropout=0.5, training=False)
    jax.block_until_ready(q_eval)

    assert q_train.shape == (B, N_ACTIONS) and q_eval.shape == (B, N_ACTIONS)
    assert bool(jnp.all(jnp.isfinite(q_train)))
    assert bool(jnp.all(jnp.isfinite(q_eval)))

    # Eval-mode reference check (loose tol: bf16 MXU operands, f32 accumulate).
    h = jnp.maximum(x @ params["w1"] + params["b1"], 0.0)
    h = jnp.maximum(h @ params["w2"] + params["b2"], 0.0)
    q_ref = h @ params["w3"] + params["b3"]
    assert jnp.allclose(q_eval, q_ref, atol=1e-1, rtol=5e-2), \
        f"max abs err {float(jnp.max(jnp.abs(q_eval - q_ref)))}"

    print("KERNEL_OK")
</pallas_src>

<mosaic_0001>
module attributes {stable_mosaic.version = 11 : i64} {
  func.func @_qnet_drop_kernel(%arg0: i32, %arg1: memref<1xi32, #tpu.memory_space<smem>>, %arg2: memref<8x32xbf16, #tpu.memory_space<vmem>>, %arg3: memref<32x64xbf16, #tpu.memory_space<vmem>>, %arg4: memref<1x64xf32, #tpu.memory_space<vmem>>, %arg5: memref<64x64xbf16, #tpu.memory_space<vmem>>, %arg6: memref<1x64xf32, #tpu.memory_space<vmem>>, %arg7: memref<64x128xbf16, #tpu.memory_space<vmem>>, %arg8: memref<1x128xf32, #tpu.memory_space<vmem>>, %arg9: memref<8x128xf32, #tpu.memory_space<vmem>>) attributes {dimension_semantics = [#tpu.dimension_semantics<parallel>], iteration_bounds = array<i64: 1>, scalar_prefetch = 1 : i64, scratch_operands = 0 : i64, tpu.core_type = #tpu.core_type<tc>, window_params = [{transform_indices = @transform_0, window_bounds = array<i64: 8, 32>}, {pipeline_mode = #tpu.pipeline_mode<synchronous>, transform_indices = @transform_1, window_bounds = array<i64: 32, 64>}, {pipeline_mode = #tpu.pipeline_mode<synchronous>, transform_indices = @transform_2, window_bounds = array<i64: 1, 64>}, {pipeline_mode = #tpu.pipeline_mode<synchronous>, transform_indices = @transform_3, window_bounds = array<i64: 64, 64>}, {pipeline_mode = #tpu.pipeline_mode<synchronous>, transform_indices = @transform_4, window_bounds = array<i64: 1, 64>}, {pipeline_mode = #tpu.pipeline_mode<synchronous>, transform_indices = @transform_5, window_bounds = array<i64: 64, 128>}, {pipeline_mode = #tpu.pipeline_mode<synchronous>, transform_indices = @transform_6, window_bounds = array<i64: 1, 128>}, {transform_indices = @transform_7, window_bounds = array<i64: 8, 128>}]} {
    %c0 = arith.constant 0 : index
    %0 = memref.load %arg1[%c0] : memref<1xi32, #tpu.memory_space<smem>>
    %c0_0 = arith.constant 0 : index
    %c0_1 = arith.constant 0 : index
    %1 = vector.load %arg2[%c0_0, %c0_1] : memref<8x32xbf16, #tpu.memory_space<vmem>>, vector<8x32xbf16>
    %c0_2 = arith.constant 0 : index
    %c0_3 = arith.constant 0 : index
    %2 = vector.load %arg3[%c0_2, %c0_3] : memref<32x64xbf16, #tpu.memory_space<vmem>>, vector<32x64xbf16>
    %cst = arith.constant dense<0.000000e+00> : vector<8x64xf32>
    %3 = tpu.matmul %1, %2, %cst {dimension_numbers = #tpu.dot_dimension_numbers<[1], [0], [0], [1], [0, 0, 1, 1], [], []>} : vector<8x32xbf16>, vector<32x64xbf16>, vector<8x64xf32> -> vector<8x64xf32>
    %c0_4 = arith.constant 0 : index
    %c0_5 = arith.constant 0 : index
    %4 = vector.load %arg4[%c0_4, %c0_5] : memref<1x64xf32, #tpu.memory_space<vmem>>, vector<1x64xf32>
    %5 = vector.broadcast %4 : vector<1x64xf32> to vector<8x64xf32>
    %6 = arith.addf %3, %5 : vector<8x64xf32>
    %cst_6 = arith.constant 0.000000e+00 : f32
    %7 = vector.broadcast %cst_6 : f32 to vector<8x64xf32>
    %8 = arith.maximumf %6, %7 : vector<8x64xf32>
    %9 = tpu.iota {dimensions = array<i32: 0>} : vector<8x64xi32>
    %10 = tpu.iota {dimensions = array<i32: 1>} : vector<8x64xi32>
    %c8_i32 = arith.constant 8 : i32
    %11 = arith.muli %arg0, %c8_i32 : i32
    %12 = vector.broadcast %11 : i32 to vector<8x64xi32>
    %13 = arith.addi %12, %9 : vector<8x64xi32>
    %c64_i32 = arith.constant 64 : i32
    %14 = vector.broadcast %c64_i32 : i32 to vector<8x64xi32>
    %15 = arith.muli %13, %14 : vector<8x64xi32>
    %16 = arith.addi %15, %10 : vector<8x64xi32>
    %c-1640531527_i32 = arith.constant -1640531527 : i32
    %17 = arith.muli %0, %c-1640531527_i32 : i32
    %18 = vector.broadcast %17 : i32 to vector<8x64xi32>
    %19 = arith.xori %16, %18 : vector<8x64xi32>
    %c-2048144789_i32 = arith.constant -2048144789 : i32
    %20 = vector.broadcast %c-2048144789_i32 : i32 to vector<8x64xi32>
    %21 = arith.xori %19, %20 : vector<8x64xi32>
    %c16_i32 = arith.constant 16 : i32
    %22 = vector.broadcast %c16_i32 : i32 to vector<8x64xi32>
    %23 = arith.shrui %21, %22 : vector<8x64xi32>
    %24 = arith.xori %21, %23 : vector<8x64xi32>
    %c2146121005_i32 = arith.constant 2146121005 : i32
    %25 = vector.broadcast %c2146121005_i32 : i32 to vector<8x64xi32>
    %26 = arith.muli %24, %25 : vector<8x64xi32>
    %c15_i32 = arith.constant 15 : i32
    %27 = vector.broadcast %c15_i32 : i32 to vector<8x64xi32>
    %28 = arith.shrui %26, %27 : vector<8x64xi32>
    %29 = arith.xori %26, %28 : vector<8x64xi32>
    %c-2073254261_i32 = arith.constant -2073254261 : i32
    %30 = vector.broadcast %c-2073254261_i32 : i32 to vector<8x64xi32>
    %31 = arith.muli %29, %30 : vector<8x64xi32>
    %c16_i32_7 = arith.constant 16 : i32
    %32 = vector.broadcast %c16_i32_7 : i32 to vector<8x64xi32>
    %33 = arith.shrui %31, %32 : vector<8x64xi32>
    %34 = arith.xori %31, %33 : vector<8x64xi32>
    %c-2147483648_i32 = arith.constant -2147483648 : i32
    %35 = vector.broadcast %c-2147483648_i32 : i32 to vector<8x64xi32>
    %36 = arith.cmpi uge, %34, %35 : vector<8x64xi32>
    %cst_8 = arith.constant 0.000000e+00 : f32
    %37 = vector.broadcast %cst_8 : f32 to vector<8x64xf32>
    %38 = arith.select %36, %8, %37 : vector<8x64xi1>, vector<8x64xf32>
    %cst_9 = arith.constant 2.000000e+00 : f32
    %39 = vector.broadcast %cst_9 : f32 to vector<8x64xf32>
    %40 = arith.mulf %38, %39 : vector<8x64xf32>
    %41 = arith.truncf %40 : vector<8x64xf32> to vector<8x64xbf16>
    %c0_10 = arith.constant 0 : index
    %c0_11 = arith.constant 0 : index
    %42 = vector.load %arg5[%c0_10, %c0_11] : memref<64x64xbf16, #tpu.memory_space<vmem>>, vector<64x64xbf16>
    %cst_12 = arith.constant dense<0.000000e+00> : vector<8x64xf32>
    %43 = tpu.matmul %41, %42, %cst_12 {dimension_numbers = #tpu.dot_dimension_numbers<[1], [0], [0], [1], [0, 0, 1, 1], [], []>} : vector<8x64xbf16>, vector<64x64xbf16>, vector<8x64xf32> -> vector<8x64xf32>
    %c0_13 = arith.constant 0 : index
    %c0_14 = arith.constant 0 : index
    %44 = vector.load %arg6[%c0_13, %c0_14] : memref<1x64xf32, #tpu.memory_space<vmem>>, vector<1x64xf32>
    %45 = vector.broadcast %44 : vector<1x64xf32> to vector<8x64xf32>
    %46 = arith.addf %43, %45 : vector<8x64xf32>
    %cst_15 = arith.constant 0.000000e+00 : f32
    %47 = vector.broadcast %cst_15 : f32 to vector<8x64xf32>
    %48 = arith.maximumf %46, %47 : vector<8x64xf32>
    %49 = tpu.iota {dimensions = array<i32: 0>} : vector<8x64xi32>
    %50 = tpu.iota {dimensions = array<i32: 1>} : vector<8x64xi32>
    %c8_i32_16 = arith.constant 8 : i32
    %51 = arith.muli %arg0, %c8_i32_16 : i32
    %52 = vector.broadcast %51 : i32 to vector<8x64xi32>
    %53 = arith.addi %52, %49 : vector<8x64xi32>
    %c64_i32_17 = arith.constant 64 : i32
    %54 = vector.broadcast %c64_i32_17 : i32 to vector<8x64xi32>
    %55 = arith.muli %53, %54 : vector<8x64xi32>
    %56 = arith.addi %55, %50 : vector<8x64xi32>
    %c-1640531527_i32_18 = arith.constant -1640531527 : i32
    %57 = arith.muli %0, %c-1640531527_i32_18 : i32
    %58 = vector.broadcast %57 : i32 to vector<8x64xi32>
    %59 = arith.xori %56, %58 : vector<8x64xi32>
    %c198677718_i32 = arith.constant 198677718 : i32
    %60 = vector.broadcast %c198677718_i32 : i32 to vector<8x64xi32>
    %61 = arith.xori %59, %60 : vector<8x64xi32>
    %c16_i32_19 = arith.constant 16 : i32
    %62 = vector.broadcast %c16_i32_19 : i32 to vector<8x64xi32>
    %63 = arith.shrui %61, %62 : vector<8x64xi32>
    %64 = arith.xori %61, %63 : vector<8x64xi32>
    %c2146121005_i32_20 = arith.constant 2146121005 : i32
    %65 = vector.broadcast %c2146121005_i32_20 : i32 to vector<8x64xi32>
    %66 = arith.muli %64, %65 : vector<8x64xi32>
    %c15_i32_21 = arith.constant 15 : i32
    %67 = vector.broadcast %c15_i32_21 : i32 to vector<8x64xi32>
    %68 = arith.shrui %66, %67 : vector<8x64xi32>
    %69 = arith.xori %66, %68 : vector<8x64xi32>
    %c-2073254261_i32_22 = arith.constant -2073254261 : i32
    %70 = vector.broadcast %c-2073254261_i32_22 : i32 to vector<8x64xi32>
    %71 = arith.muli %69, %70 : vector<8x64xi32>
    %c16_i32_23 = arith.constant 16 : i32
    %72 = vector.broadcast %c16_i32_23 : i32 to vector<8x64xi32>
    %73 = arith.shrui %71, %72 : vector<8x64xi32>
    %74 = arith.xori %71, %73 : vector<8x64xi32>
    %c-2147483648_i32_24 = arith.constant -2147483648 : i32
    %75 = vector.broadcast %c-2147483648_i32_24 : i32 to vector<8x64xi32>
    %76 = arith.cmpi uge, %74, %75 : vector<8x64xi32>
    %cst_25 = arith.constant 0.000000e+00 : f32
    %77 = vector.broadcast %cst_25 : f32 to vector<8x64xf32>
    %78 = arith.select %76, %48, %77 : vector<8x64xi1>, vector<8x64xf32>
    %cst_26 = arith.constant 2.000000e+00 : f32
    %79 = vector.broadcast %cst_26 : f32 to vector<8x64xf32>
    %80 = arith.mulf %78, %79 : vector<8x64xf32>
    %81 = arith.truncf %80 : vector<8x64xf32> to vector<8x64xbf16>
    %c0_27 = arith.constant 0 : index
    %c0_28 = arith.constant 0 : index
    %82 = vector.load %arg7[%c0_27, %c0_28] : memref<64x128xbf16, #tpu.memory_space<vmem>>, vector<64x128xbf16>
    %cst_29 = arith.constant dense<0.000000e+00> : vector<8x128xf32>
    %83 = tpu.matmul %81, %82, %cst_29 {dimension_numbers = #tpu.dot_dimension_numbers<[1], [0], [0], [1], [0, 0, 1, 1], [], []>} : vector<8x64xbf16>, vector<64x128xbf16>, vector<8x128xf32> -> vector<8x128xf32>
    %c0_30 = arith.constant 0 : index
    %c0_31 = arith.constant 0 : index
    %84 = vector.load %arg8[%c0_30, %c0_31] : memref<1x128xf32, #tpu.memory_space<vmem>>, vector<1x128xf32>
    %85 = vector.broadcast %84 : vector<1x128xf32> to vector<8x128xf32>
    %86 = arith.addf %83, %85 : vector<8x128xf32>
    %c0_32 = arith.constant 0 : index
    %c0_33 = arith.constant 0 : index
    %87 = vector.load %arg9[%c0_32, %c0_33] : memref<8x128xf32, #tpu.memory_space<vmem>>, vector<8x128xf32>
    tpu.vector_store %arg9[%c0_32, %c0_33], %86 {strides = array<i32>} : memref<8x128xf32, #tpu.memory_space<vmem>>, vector<8x128xf32>,
    return
  }
  func.func @transform_0(%arg0: i32, %arg1: memref<1xi32, #tpu.memory_space<smem>>) -> (i32, i32) {
    %c0_i32 = arith.constant 0 : i32
    %c0_i32_0 = arith.constant 0 : i32
    return %arg0, %c0_i32 : i32, i32
  }
  func.func @transform_1(%arg0: i32, %arg1: memref<1xi32, #tpu.memory_space<smem>>) -> (i32, i32) {
    %c0_i32 = arith.constant 0 : i32
    %c0_i32_0 = arith.constant 0 : i32
    %c0_i32_1 = arith.constant 0 : i32
    return %c0_i32, %c0_i32_0 : i32, i32
  }
  func.func @transform_2(%arg0: i32, %arg1: memref<1xi32, #tpu.memory_space<smem>>) -> (i32, i32) {
    %c0_i32 = arith.constant 0 : i32
    %c0_i32_0 = arith.constant 0 : i32
    %c0_i32_1 = arith.constant 0 : i32
    return %c0_i32, %c0_i32_0 : i32, i32
  }
  func.func @transform_3(%arg0: i32, %arg1: memref<1xi32, #tpu.memory_space<smem>>) -> (i32, i32) {
    %c0_i32 = arith.constant 0 : i32
    %c0_i32_0 = arith.constant 0 : i32
    %c0_i32_1 = arith.constant 0 : i32
    return %c0_i32, %c0_i32_0 : i32, i32
  }
  func.func @transform_4(%arg0: i32, %arg1: memref<1xi32, #tpu.memory_space<smem>>) -> (i32, i32) {
    %c0_i32 = arith.constant 0 : i32
    %c0_i32_0 = arith.constant 0 : i32
    %c0_i32_1 = arith.constant 0 : i32
    return %c0_i32, %c0_i32_0 : i32, i32
  }
  func.func @transform_5(%arg0: i32, %arg1: memref<1xi32, #tpu.memory_space<smem>>) -> (i32, i32) {
    %c0_i32 = arith.constant 0 : i32
    %c0_i32_0 = arith.constant 0 : i32
    %c0_i32_1 = arith.constant 0 : i32
    return %c0_i32, %c0_i32_0 : i32, i32
  }
  func.func @transform_6(%arg0: i32, %arg1: memref<1xi32, #tpu.memory_space<smem>>) -> (i32, i32) {
    %c0_i32 = arith.constant 0 : i32
    %c0_i32_0 = arith.constant 0 : i32
    %c0_i32_1 = arith.constant 0 : i32
    return %c0_i32, %c0_i32_0 : i32, i32
  }
  func.func @transform_7(%arg0: i32, %arg1: memref<1xi32, #tpu.memory_space<smem>>) -> (i32, i32) {
    %c0_i32 = arith.constant 0 : i32
    %c0_i32_0 = arith.constant 0 : i32
    return %arg0, %c0_i32 : i32, i32
  }
}

</mosaic_0001>

<bundles_post_ra>
// kernel: tpu_custom_call.1
= control target key start
LH: loop header
LB: loop body
LE: loop exit
PB: predicated region body
PF: predicated region fallthrough
CT: control target
= control target key end

     0   :  { %14 = vsyncpa [#allocation5], 0  ;;  %s573_s0 = inlined_call_operand.<no memory space> [shape: s32[1], index: 0, kind: input, shape index: {}]   ;;  %s574_s1 = inlined_call_operand.hbm [shape: bf16[8,32], index: 1, kind: input, shape index: {}]   ;;  %s575_s2 = inlined_call_operand.hbm [shape: bf16[32,64], index: 2, kind: input, shape index: {}]   ;;  %s576_s3 = inlined_call_operand.vmem [shape: f32[1,64], index: 3, kind: input, shape index: {}]   ;;  %s577_s4 = inlined_call_operand.hbm [shape: bf16[64,64], index: 4, kind: input, shape index: {}]   ;;  %s578_s5 = inlined_call_operand.vmem [shape: f32[1,64], index: 5, kind: input, shape index: {}]   ;;  %s579_s6 = inlined_call_operand.hbm [shape: bf16[64,128], index: 6, kind: input, shape index: {}]   ;;  %s580_s7 = inlined_call_operand.vmem [shape: f32[1,128], index: 7, kind: input, shape index: {}]   ;;  %s581_s8 = inlined_call_operand.hbm [shape: f32[8,128], index: 8, kind: output, shape index: {}]  }
   0x1   :  { %15 = vsyncpa [#allocation8], 0 }
   0x2   :  { %16 = vsyncpa [#allocation11], 0  ;;  %s33_s29 = sshll.u32 %s575_s2, 4  ;;  %s34_s29 = int_to_ptr.hbm [resolvable:$true] %s33_s29 }
   0x3   :  { %17 = vsyncpa [#allocation6], 0  ;;  %s492_s30 = smov [#allocation7]   ;;  %s23_s12 = sshll.u32 %s574_s1, 4  ;;  %s24_s12 = int_to_ptr.hbm [resolvable:$true] %s23_s12 }
   0x4   :  { %s35_s9 = sshll.u32 %s492_s30, 4  ;;  %s493_s13 = smov 64   ;;  %s36_s9 = int_to_ptr.vmem [resolvable:$true] %s35_s9 }
   0x5   :  { %s494_s14 = smov 4   ;;  %s495_s15 = smov [#allocation4]  }
   0x6   :  { %41 = dma.hbm_to_vmem [thread:$0]  %s34_s29, 256, %s36_s9, [#allocation8], %s493_s13, %s493_s13, %s494_s14  }
   0x7   :  { %s25_s16 = sshll.u32 %s495_s15, 4  ;;  %s48_s19 = sshll.u32 %s577_s4, 4  ;;  %s26_s16 = int_to_ptr.vmem [resolvable:$true] %s25_s16  ;;  %s49_s19 = int_to_ptr.hbm [resolvable:$true] %s48_s19 }
   0x8   :  { %28 = dma.hbm_to_vmem [thread:$0]  %s24_s12, 64, %s26_s16, [#allocation5]  }
   0x9   :  { %s63_s21 = sshll.u32 %s579_s6, 4  ;;  %s496_s22 = smov [#allocation9]   ;;  %s64_s21 = int_to_ptr.hbm [resolvable:$true] %s63_s21 }
   0xa   :  { %s50_s23 = sshll.u32 %s496_s22, 4  ;;  %s497_s1 = smov [#allocation10]   ;;  %s51_s23 = int_to_ptr.vmem [resolvable:$true] %s50_s23 }
   0xb   :  { %56 = dma.hbm_to_vmem [thread:$0]  %s49_s19, 512, %s51_s23, [#allocation8], %s493_s13, %s493_s13, %s494_s14  }
   0xc   :  { %s65_s24 = sshll.u32 %s497_s1, 4  ;;  %s66_s24 = int_to_ptr.vmem [resolvable:$true] %s65_s24 }
   0xd   :  { %71 = dma.hbm_to_vmem [thread:$0]  %s64_s21, 512, %s66_s24, [#allocation11], %s493_s13, %s493_s13, %s494_s14  }
   0xe   :  { %484 = dma.done.wait [#allocation5], 64  }
   0xf   :  { %485 = vsyncadd [#allocation5], 4294967232 }
  0x10   :  { %486 = dma.done.wait [#allocation8], 768  }
  0x11   :  { %487 = vsyncadd [#allocation8], 4294966528 }
  0x12   :  { %488 = dma.done.wait [#allocation11], 512  }
  0x13   :  { %489 = vsyncadd [#allocation11], 4294966784  ;;  %v345_v0 = vld [vmem:[#allocation7 + $0x8] sm:$0xff]  ;;  %v344_v2 = vld [vmem:[#allocation7] sm:$0xff]  ;;  %vm113_vm0 = vcmask 261120   ;;  %v131_v5 = vlaneseq  ;;  %vm194_vm2 = vcmask 523264  }
  0x14   :  { %v349_v1 = vld [vmem:[#allocation9 + $0x18] sm:$0xff]  ;;  %123 = vmatpush.bf16.msra.mxu0 %v345_v0  ;;  %v348_v3 = vld [vmem:[#allocation9 + $0x10] sm:$0xff]  ;;  %v92_v4 = vld [vmem:[#allocation4] sm:$0xf]  ;;  %s140_s25 = smul.u32 2654435769, %s573_s0 }
  0x15   :  { %202 = vmatpush.bf16.msra.mxu1 %v349_v1  ;;  %v132_v6 = vshrl.u32 %v131_v5, 7  ;;  %v134_v7 = vand.u32 127, %v131_v5  ;;  %v347_v14 = vld [vmem:[#allocation9 + $0x8] sm:$0xff]  ;;  %v346_v16 = vld [vmem:[#allocation9] sm:$0xff]  ;;  %v353_v19 = vld [vmem:[#allocation10 + $0x18] sm:$0xff]  ;;  %s498_s30 = smov [#allocation12]  }
  0x16   :  { %v141_v10 = vstv %s140_s25  ;;  %270 = vmatpush.bf16.msra.mxu2 %v353_v19  ;;  %v352_v20 = vld [vmem:[#allocation10 + $0x10] sm:$0xff]  ;;  %v361_v25 = vld [vmem:[%s576_s3] ss:$0 sm:$0xff]  ;;  %v350_v38 = vld [vmem:[#allocation10] sm:$0xff]  ;;  %s285_s9 = sshll.u32 %s498_s30, 4  ;;  %s286_s9 = int_to_ptr.vmem [resolvable:$true] %s285_s9 }
  0x17   :  { %v138_v8 = vmul.u32 64, %v132_v6  ;;  %v351_v36 = vld [vmem:[#allocation10 + $0x8] sm:$0xff] }
  0x18   :  { %124 = vmatpush.bf16.msra.mxu0 %v344_v2  ;;  %v362_v45 = vld [vmem:[%s578_s5] ss:$0 sm:$0xff]  ;;  %s287_s5 = sshll.u32 %s581_s8, 4  ;;  %s288_s5 = int_to_ptr.hbm [resolvable:$true] %s287_s5 }
  0x19   :  { %203 = vmatpush.bf16.msra.mxu1 %v348_v3  ;;  %v139_v9 = vadd.s32 %v138_v8, %v134_v7  ;;  %v363_v54 = vld [vmem:[%s580_s7] ss:$0 sm:$0xff] }
  0x1a   :  { %271 = vmatpush.bf16.msra.mxu2 %v352_v20 }
  0x1b   :  { %307 = vmatmul.msk.bf16.vlgmr.msra.gmra.mxu0 %vm113_vm0, %v92_v4  ;;  %v142_v11 = vxor.u32 %v141_v10, %v139_v9 }
  0x1d   :  { %v143_v12 = vxor.u32 2246822507, %v142_v11  ;;  %204 = vmatpush.bf16.msra.mxu1 %v347_v14  ;;  %v212_v34 = vxor.u32 198677718, %v142_v11 }
  0x1e   :  { %272 = vmatpush.bf16.msra.mxu2 %v351_v36 }
  0x1f   :  { %v144_v13 = vshrl.u32 %v143_v12, 16  ;;  %v213_v35 = vshrl.u32 %v212_v34, 16 }
  0x21   :  { %v145_v15 = vxor.u32 %v144_v13, %v143_v12  ;;  %205 = vmatpush.bf16.msra.mxu1 %v346_v16  ;;  %v214_v37 = vxor.u32 %v213_v35, %v212_v34 }
  0x22   :  { %273 = vmatpush.bf16.msra.mxu2 %v350_v38 }
  0x23   :  { %v146_v17 = vmul.u32 2146121005, %v145_v15  ;;  %v215_v39 = vmul.u32 2146121005, %v214_v37 }
  0x25   :  { %v147_v18 = vshrl.u32 %v146_v17, 15  ;;  %v216_v40 = vshrl.u32 %v215_v39, 15 }
  0x27   :  { %v148_v21 = vxor.u32 %v147_v18, %v146_v17  ;;  %v217_v41 = vxor.u32 %v216_v40, %v215_v39 }
  0x29   :  { %v149_v22 = vmul.u32 2221713035, %v148_v21  ;;  %v218_v42 = vmul.u32 2221713035, %v217_v41 }
  0x2b   :  { %v150_v23 = vshrl.u32 %v149_v22, 16  ;;  %v219_v43 = vshrl.u32 %v218_v42, 16 }
  0x2d   :  { %v151_v24 = vxor.u32 %v150_v23, %v149_v22  ;;  %v220_v44 = vxor.u32 %v219_v43, %v218_v42 }
  0x2f   :  { %v308_v26 = vxor.u32 2147483648, %v151_v24  ;;  %v326_v46 = vxor.u32 2147483648, %v220_v44 }
  0x31   :  { %vm154_vm1 = vcmp.ge.s32.totalorder %v308_v26, 0  ;;  %vm223_vm3 = vcmp.ge.s32.totalorder %v326_v46, 0 }
  0x98   :  { %v126_v27 = vpop.f32.mrf.mxu0 }
  0x99   :  { %v127_v28 = vadd.f32 %v361_v25, %v126_v27 }
  0x9b   :  { %v130_v29 = vmax.f32 %v127_v28, 0.0 }
  0x9d   :  { %v155_v30 = vsel %vm154_vm1, %v130_v29, 0.0 }
  0x9e   :  { %v156_v31 = vmul.f32 2.0, %v155_v30 }
  0xa0   :  { %v157_v32 = vpack.c.bf16 %v156_v31, %v156_v31  ;;  %v128_v33 = vpop.f32.mrf.mxu0 }
  0xa2   :  { %325 = vmatmul.msk.bf16.vlgmr.msra.gmra.mxu1 %vm194_vm2, %v157_v32 }
 0x11f   :  { %v207_v47 = vpop.f32.mrf.mxu1 }
 0x120   :  { %v208_v48 = vadd.f32 %v362_v45, %v207_v47 }
 0x122   :  { %v211_v49 = vmax.f32 %v208_v48, 0.0 }
 0x124   :  { %v224_v50 = vsel %vm223_vm3, %v211_v49, 0.0 }
 0x125   :  { %v225_v51 = vmul.f32 2.0, %v224_v50 }
 0x127   :  { %v226_v52 = vpack.c.bf16 %v225_v51, %v225_v51  ;;  %v209_v53 = vpop.f32.mrf.mxu1 }
 0x129   :  { %343 = vmatmul.msk.bf16.vlgmr.msra.gmra.mxu2 %vm194_vm2, %v226_v52 }
 0x1ac   :  { %v275_v55 = vpop.f32.mrf.mxu2 }
 0x1ad   :  { %v276_v56 = vadd.f32 %v363_v54, %v275_v55 }
 0x1af   :  { %279 = vst [vmem:[#allocation12] sm:$0xff] %v276_v56 }
 0x1b0   :  { %290 = dma.vmem_to_hbm [thread:$0]  %s286_s9, 128, %s288_s5, [#allocation6]  }
 0x1b4   :  { %v277_v57 = vpop.f32.mrf.mxu2 }
 0x1b5   :  { %490 = dma.done.wait [#allocation6], 128  }
 0x1b6   :  { %491 = vsyncadd [#allocation6], 4294967168 }
 0x1b7   :  { %295 = vsyncpa [#allocation5], 1 }
 0x1b8   :  { %296 = vsyncpa [#allocation8], 1 }
 0x1b9   :  { %297 = vsyncpa [#allocation11], 1 }
 0x1ba   :  { %298 = vsyncpa [#allocation6], 1 }

</bundles_post_ra>
